<compile_context>
chip_gen: v6e
topology: v6e:2x2x1
jax: 0.10.0
libtpu: 0.0.40
codegen_flags: <defaults>
</compile_context>

<pallas_src>
import functools

import jax
import jax.numpy as jnp
from jax.experimental import pallas as pl
from jax.experimental.pallas import tpu as pltpu


def _round_up(x: int, m: int) -> int:
    return (x + m - 1) // m * m


def _token_embedding_kernel(
    ids_ref,     # (TM, 1)  int32
    feats_ref,   # (TM, 4)  f32
    table_ref,   # (V, D)   f32   embedding.weight @ Wc_learned   (pre-folded)
    w1_ref,      # (4, 32)  f32   structure_encoder[0].weight^T
    b1_ref,      # (1, 32)  f32
    w2_ref,      # (32, D)  f32   structure_encoder[2].weight^T @ Wc_structural
    bias_ref,    # (1, D)   f32   b2 @ Wc_structural + bc
    gamma_ref,   # (1, D)   f32   LayerNorm weight
    beta_ref,    # (1, D)   f32   LayerNorm bias
    out_ref,     # (TM, D)  f32
):
    ids = ids_ref[...]                                    # (TM, 1) int32
    tm = ids.shape[0]
    v = table_ref.shape[0]

    # --- nn.Embedding gather as one-hot @ (pre-folded) table on the MXU ----
    col = jax.lax.broadcasted_iota(jnp.int32, (tm, v), 1)
    onehot = (ids == col).astype(jnp.float32)             # (TM, V)
    learned = jnp.dot(onehot, table_ref[...],
                      preferred_element_type=jnp.float32)  # (TM, D)

    # --- structure encoder: Linear(4,32) -> ReLU -> Linear(32,D)-folded ----
    h = jnp.dot(feats_ref[...], w1_ref[...],
                preferred_element_type=jnp.float32) + b1_ref[...]
    h = jnp.maximum(h, 0.0)
    pre = learned + jnp.dot(h, w2_ref[...],
                            preferred_element_type=jnp.float32) + bias_ref[...]

    # --- LayerNorm(D), eps = 1e-5 (PyTorch default) -------------------------
    mean = jnp.mean(pre, axis=-1, keepdims=True)
    centered = pre - mean
    var = jnp.mean(centered * centered, axis=-1, keepdims=True)
    normed = centered * jax.lax.rsqrt(var + 1e-5)
    out_ref[...] = normed * gamma_ref[...] + beta_ref[...]


def init_params(key, vocab_size: int, embed_dim: int = 64):
    """Deterministic synthetic parameters matching TokenEmbedding.__init__."""
    ks = jax.random.split(key, 8)
    d = embed_dim
    return {
        "table": jax.random.normal(ks[0], (vocab_size, d), jnp.float32) * 0.02,
        "w1": jax.random.normal(ks[1], (4, 32), jnp.float32) * 0.1,       # Linear(4,32).weight^T
        "b1": jax.random.normal(ks[2], (1, 32), jnp.float32) * 0.01,
        "w2": jax.random.normal(ks[3], (32, d), jnp.float32) * 0.1,       # Linear(32,D).weight^T
        "b2": jax.random.normal(ks[4], (1, d), jnp.float32) * 0.01,
        "wc": jax.random.normal(ks[5], (2 * d, d), jnp.float32) * 0.05,   # Linear(2D,D).weight^T
        "bc": jax.random.normal(ks[6], (1, d), jnp.float32) * 0.01,
        "gamma": jnp.ones((1, d), jnp.float32),                           # LayerNorm.weight
        "beta": jnp.zeros((1, d), jnp.float32),                           # LayerNorm.bias
    }


def fold_params(params):
    """Fold the combiner Linear(2D, D) into the embedding table / encoder.

    Linear -> Linear with no nonlinearity composes exactly:
        cat([learned, structural]) @ Wc + bc
      = learned @ Wc[:D] + structural @ Wc[D:] + bc
      = onehot @ (table @ Wc[:D]) + h @ (W2 @ Wc[D:]) + (b2 @ Wc[D:] + bc)
    Done once offline; the kernel never sees the (2D, D) combiner weight.
    """
    d = params["table"].shape[1]
    wc1 = params["wc"][:d, :]
    wc2 = params["wc"][d:, :]
    return {
        "table_f": (params["table"] @ wc1).astype(jnp.float32),   # (V, D)
        "w1": params["w1"].astype(jnp.float32),
        "b1": params["b1"].astype(jnp.float32),
        "w2_f": (params["w2"] @ wc2).astype(jnp.float32),         # (32, D)
        "bias_f": (params["b2"] @ wc2 + params["bc"]).astype(jnp.float32),
        "gamma": params["gamma"].astype(jnp.float32),
        "beta": params["beta"].astype(jnp.float32),
    }


@functools.partial(jax.jit, static_argnames=("tm", "single_buffer_weights"))
def _token_embedding_jit(token_ids, token_features, fp, *, tm,
                         single_buffer_weights):
    b, s = token_ids.shape
    v, d = fp["table_f"].shape
    n = b * s

    # Row tile: multiple of 8 sublanes, capped so tiny inputs don't over-pad.
    tm_eff = max(8, min(_round_up(tm, 8), _round_up(n, 8)))
    n_pad = _round_up(n, tm_eff)
    grid = n_pad // tm_eff

    ids = token_ids.reshape(n, 1).astype(jnp.int32)
    feats = token_features.reshape(n, 4).astype(jnp.float32)
    if n_pad != n:
        ids = jnp.pad(ids, ((0, n_pad - n), (0, 0)))        # pad rows -> id 0
        feats = jnp.pad(feats, ((0, n_pad - n), (0, 0)))

    # Constant (grid-invariant) operands: full block, fixed index_map,
    # single-buffered when supported (their window never changes).
    const_kwargs = {}
    if single_buffer_weights:
        const_kwargs = dict(pipeline_mode=pl.Buffered(buffer_count=1))

    def const(arr):
        return pl.BlockSpec(arr.shape, lambda i: (0, 0), **const_kwargs)

    # --- advisory cost estimate ---------------------------------------------
    flops = 2 * n_pad * (v * d + 4 * 32 + 32 * d) + 10 * n_pad * d
    bytes_accessed = (
        n_pad * (1 + 4 + d) * 4                              # ids + feats + out
        + (v * d + 4 * 32 + 32 + 32 * d + 3 * d) * 4         # weights (once)
    )
    cost = pl.CostEstimate(flops=flops, transcendentals=n_pad,
                           bytes_accessed=bytes_accessed)

    # --- explicit VMEM budget (v7x has only 64 MiB physical) -----------------
    lane = 128
    wbuf = 1 if single_buffer_weights else 2
    weight_bytes = wbuf * (_round_up(v, 8) * _round_up(d, lane)
                           + 8 * lane                        # w1/b1 padded
                           + _round_up(32, 8) * _round_up(d, lane)
                           + 3 * 8 * _round_up(d, lane)) * 4
    io_bytes = 2 * tm_eff * (2 * lane + _round_up(d, lane)) * 4   # dbl-buffered tiles
    onehot_bytes = tm_eff * _round_up(v, lane) * 4                # (TM, V) intermediate
    scratch_bytes = 4 * tm_eff * _round_up(d, lane) * 4           # misc intermediates
    est = weight_bytes + io_bytes + onehot_bytes + scratch_bytes + (1 << 20)
    vmem_limit = int(min(100 * (1 << 20), max(4 * (1 << 20), 2 * est)))

    out = pl.pallas_call(
        _token_embedding_kernel,
        out_shape=jax.ShapeDtypeStruct((n_pad, d), jnp.float32),
        grid_spec=pltpu.PrefetchScalarGridSpec(
            num_scalar_prefetch=0,
            grid=(grid,),
            in_specs=[
                pl.BlockSpec((tm_eff, 1), lambda i: (i, 0)),   # ids
                pl.BlockSpec((tm_eff, 4), lambda i: (i, 0)),   # features
                const(fp["table_f"]),
                const(fp["w1"]), const(fp["b1"]),
                const(fp["w2_f"]), const(fp["bias_f"]),
                const(fp["gamma"]), const(fp["beta"]),
            ],
            out_specs=pl.BlockSpec((tm_eff, d), lambda i: (i, 0)),
        ),
        compiler_params=pltpu.CompilerParams(
            dimension_semantics=("parallel",),   # megacore sharding on v7x
            vmem_limit_bytes=vmem_limit,
        ),
        cost_estimate=cost,
    )(ids, feats, fp["table_f"], fp["w1"], fp["b1"], fp["w2_f"],
      fp["bias_f"], fp["gamma"], fp["beta"])

    return out[:n].reshape(b, s, d)


def token_embedding(token_ids, token_features, folded_params, *, tm=256):
    """Pallas forward of TokenEmbedding.

    token_ids:      (B, S)      int
    token_features: (B, S, 4)   float
    folded_params:  output of fold_params()
    returns:        (B, S, D)   float32
    """
    try:
        return _token_embedding_jit(token_ids, token_features, folded_params,
                                    tm=tm, single_buffer_weights=True)
    except Exception:
        # Fallback for JAX versions that reject single-buffered (Buffered(1))
        # pallas_call operands -- identical math, default double buffering.
        return _token_embedding_jit(token_ids, token_features, folded_params,
                                    tm=tm, single_buffer_weights=False)


def token_embedding_ref(token_ids, token_features, params):
    """Pure-JAX reference mirroring the PyTorch forward (unfolded weights)."""
    learned = params["table"][token_ids]                            # (B,S,D)
    h = jnp.maximum(token_features @ params["w1"] + params["b1"][0], 0.0)
    structural = h @ params["w2"] + params["b2"][0]                 # (B,S,D)
    combined = jnp.concatenate([learned, structural], axis=-1)      # (B,S,2D)
    pre = combined @ params["wc"] + params["bc"][0]                 # (B,S,D)
    mean = pre.mean(-1, keepdims=True)
    var = ((pre - mean) ** 2).mean(-1, keepdims=True)
    normed = (pre - mean) / jnp.sqrt(var + 1e-5)
    return normed * params["gamma"][0] + params["beta"][0]


if __name__ == "__main__":
    key = jax.random.PRNGKey(0)
    k_ids, k_feat, k_param = jax.random.split(key, 3)

    vocab_size = 50
    embed_dim = 64
    batch, seq = 2, 8

    params = init_params(k_param, vocab_size, embed_dim)
    folded = fold_params(params)

    token_ids = jax.random.randint(k_ids, (batch, seq), 0, vocab_size, jnp.int32)
    token_features = jax.random.uniform(k_feat, (batch, seq, 4), jnp.float32)

    out = token_embedding(token_ids, token_features, folded, tm=256)
    out = jax.block_until_ready(out)

    ref = token_embedding_ref(token_ids, token_features, params)
    assert out.shape == (batch, seq, embed_dim)
    assert jnp.allclose(out, ref, atol=1e-4, rtol=1e-4), \
        float(jnp.max(jnp.abs(out - ref)))

    print("KERNEL_OK")
</pallas_src>

<mosaic_0001>
module attributes {stable_mosaic.version = 11 : i64} {
  func.func @_token_embedding_kernel(%arg0: i32, %arg1: memref<16x1xi32, #tpu.memory_space<vmem>>, %arg2: memref<16x4xf32, #tpu.memory_space<vmem>>, %arg3: memref<50x64xf32, #tpu.memory_space<vmem>>, %arg4: memref<4x32xf32, #tpu.memory_space<vmem>>, %arg5: memref<1x32xf32, #tpu.memory_space<vmem>>, %arg6: memref<32x64xf32, #tpu.memory_space<vmem>>, %arg7: memref<1x64xf32, #tpu.memory_space<vmem>>, %arg8: memref<1x64xf32, #tpu.memory_space<vmem>>, %arg9: memref<1x64xf32, #tpu.memory_space<vmem>>, %arg10: memref<16x64xf32, #tpu.memory_space<vmem>>) attributes {dimension_semantics = [#tpu.dimension_semantics<parallel>], iteration_bounds = array<i64: 1>, scalar_prefetch = 0 : i64, scratch_operands = 0 : i64, tpu.core_type = #tpu.core_type<tc>, window_params = [{transform_indices = @transform_0, window_bounds = array<i64: 16, 1>}, {transform_indices = @transform_1, window_bounds = array<i64: 16, 4>}, {pipeline_mode = #tpu.pipeline_mode<synchronous>, transform_indices = @transform_2, window_bounds = array<i64: 50, 64>}, {pipeline_mode = #tpu.pipeline_mode<synchronous>, transform_indices = @transform_3, window_bounds = array<i64: 4, 32>}, {pipeline_mode = #tpu.pipeline_mode<synchronous>, transform_indices = @transform_4, window_bounds = array<i64: 1, 32>}, {pipeline_mode = #tpu.pipeline_mode<synchronous>, transform_indices = @transform_5, window_bounds = array<i64: 32, 64>}, {pipeline_mode = #tpu.pipeline_mode<synchronous>, transform_indices = @transform_6, window_bounds = array<i64: 1, 64>}, {pipeline_mode = #tpu.pipeline_mode<synchronous>, transform_indices = @transform_7, window_bounds = array<i64: 1, 64>}, {pipeline_mode = #tpu.pipeline_mode<synchronous>, transform_indices = @transform_8, window_bounds = array<i64: 1, 64>}, {transform_indices = @transform_9, window_bounds = array<i64: 16, 64>}]} {
    %c0 = arith.constant 0 : index
    %c0_0 = arith.constant 0 : index
    %0 = vector.load %arg1[%c0, %c0_0] : memref<16x1xi32, #tpu.memory_space<vmem>>, vector<16x1xi32>
    %1 = tpu.iota {dimensions = array<i32: 1>} : vector<16x50xi32>
    %2 = vector.broadcast %0 : vector<16x1xi32> to vector<16x50xi32>
    %3 = arith.cmpi eq, %2, %1 : vector<16x50xi32>
    %4 = arith.extui %3 : vector<16x50xi1> to vector<16x50xi32>
    %5 = arith.sitofp %4 : vector<16x50xi32> to vector<16x50xf32>
    %c0_1 = arith.constant 0 : index
    %c0_2 = arith.constant 0 : index
    %6 = vector.load %arg3[%c0_1, %c0_2] : memref<50x64xf32, #tpu.memory_space<vmem>>, vector<50x64xf32>
    %cst = arith.constant dense<0.000000e+00> : vector<16x64xf32>
    %7 = tpu.matmul %5, %6, %cst {dimension_numbers = #tpu.dot_dimension_numbers<[1], [0], [0], [1], [0, 0, 1, 1], [], []>} : vector<16x50xf32>, vector<50x64xf32>, vector<16x64xf32> -> vector<16x64xf32>
    %c0_3 = arith.constant 0 : index
    %c0_4 = arith.constant 0 : index
    %8 = vector.load %arg2[%c0_3, %c0_4] : memref<16x4xf32, #tpu.memory_space<vmem>>, vector<16x4xf32>
    %c0_5 = arith.constant 0 : index
    %c0_6 = arith.constant 0 : index
    %9 = vector.load %arg4[%c0_5, %c0_6] : memref<4x32xf32, #tpu.memory_space<vmem>>, vector<4x32xf32>
    %cst_7 = arith.constant dense<0.000000e+00> : vector<16x32xf32>
    %10 = tpu.matmul %8, %9, %cst_7 {dimension_numbers = #tpu.dot_dimension_numbers<[1], [0], [0], [1], [0, 0, 1, 1], [], []>} : vector<16x4xf32>, vector<4x32xf32>, vector<16x32xf32> -> vector<16x32xf32>
    %c0_8 = arith.constant 0 : index
    %c0_9 = arith.constant 0 : index
    %11 = vector.load %arg5[%c0_8, %c0_9] : memref<1x32xf32, #tpu.memory_space<vmem>>, vector<1x32xf32>
    %12 = vector.broadcast %11 : vector<1x32xf32> to vector<16x32xf32>
    %13 = arith.addf %10, %12 : vector<16x32xf32>
    %cst_10 = arith.constant 0.000000e+00 : f32
    %14 = vector.broadcast %cst_10 : f32 to vector<16x32xf32>
    %15 = arith.maximumf %13, %14 : vector<16x32xf32>
    %c0_11 = arith.constant 0 : index
    %c0_12 = arith.constant 0 : index
    %16 = vector.load %arg6[%c0_11, %c0_12] : memref<32x64xf32, #tpu.memory_space<vmem>>, vector<32x64xf32>
    %cst_13 = arith.constant dense<0.000000e+00> : vector<16x64xf32>
    %17 = tpu.matmul %15, %16, %cst_13 {dimension_numbers = #tpu.dot_dimension_numbers<[1], [0], [0], [1], [0, 0, 1, 1], [], []>} : vector<16x32xf32>, vector<32x64xf32>, vector<16x64xf32> -> vector<16x64xf32>
    %18 = arith.addf %7, %17 : vector<16x64xf32>
    %c0_14 = arith.constant 0 : index
    %c0_15 = arith.constant 0 : index
    %19 = vector.load %arg7[%c0_14, %c0_15] : memref<1x64xf32, #tpu.memory_space<vmem>>, vector<1x64xf32>
    %20 = vector.broadcast %19 : vector<1x64xf32> to vector<16x64xf32>
    %21 = arith.addf %18, %20 : vector<16x64xf32>
    %cst_16 = arith.constant dense<0.000000e+00> : vector<16xf32>
    %22 = vector.multi_reduction <add>, %21, %cst_16 [1] : vector<16x64xf32> to vector<16xf32>
    %23 = vector.shape_cast %22 : vector<16xf32> to vector<16x1xf32>
    %cst_17 = arith.constant 6.400000e+01 : f32
    %24 = vector.broadcast %cst_17 : f32 to vector<16x1xf32>
    %25 = arith.divf %23, %24 : vector<16x1xf32>
    %26 = vector.broadcast %25 : vector<16x1xf32> to vector<16x64xf32>
    %27 = arith.subf %21, %26 : vector<16x64xf32>
    %28 = arith.mulf %27, %27 : vector<16x64xf32>
    %cst_18 = arith.constant dense<0.000000e+00> : vector<16xf32>
    %29 = vector.multi_reduction <add>, %28, %cst_18 [1] : vector<16x64xf32> to vector<16xf32>
    %30 = vector.shape_cast %29 : vector<16xf32> to vector<16x1xf32>
    %cst_19 = arith.constant 6.400000e+01 : f32
    %31 = vector.broadcast %cst_19 : f32 to vector<16x1xf32>
    %32 = arith.divf %30, %31 : vector<16x1xf32>
    %cst_20 = arith.constant 9.99999974E-6 : f32
    %33 = vector.broadcast %cst_20 : f32 to vector<16x1xf32>
    %34 = arith.addf %32, %33 : vector<16x1xf32>
    %35 = math.rsqrt %34 : vector<16x1xf32>
    %36 = vector.broadcast %35 : vector<16x1xf32> to vector<16x64xf32>
    %37 = arith.mulf %27, %36 : vector<16x64xf32>
    %c0_21 = arith.constant 0 : index
    %c0_22 = arith.constant 0 : index
    %38 = vector.load %arg8[%c0_21, %c0_22] : memref<1x64xf32, #tpu.memory_space<vmem>>, vector<1x64xf32>
    %39 = vector.broadcast %38 : vector<1x64xf32> to vector<16x64xf32>
    %40 = arith.mulf %37, %39 : vector<16x64xf32>
    %c0_23 = arith.constant 0 : index
    %c0_24 = arith.constant 0 : index
    %41 = vector.load %arg9[%c0_23, %c0_24] : memref<1x64xf32, #tpu.memory_space<vmem>>, vector<1x64xf32>
    %42 = vector.broadcast %41 : vector<1x64xf32> to vector<16x64xf32>
    %43 = arith.addf %40, %42 : vector<16x64xf32>
    %c0_25 = arith.constant 0 : index
    %c0_26 = arith.constant 0 : index
    %44 = vector.load %arg10[%c0_25, %c0_26] : memref<16x64xf32, #tpu.memory_space<vmem>>, vector<16x64xf32>
    tpu.vector_store %arg10[%c0_25, %c0_26], %43 {strides = array<i32>} : memref<16x64xf32, #tpu.memory_space<vmem>>, vector<16x64xf32>,
    return
  }
  func.func @transform_0(%arg0: i32) -> (i32, i32) {
    %c0_i32 = arith.constant 0 : i32
    %c0_i32_0 = arith.constant 0 : i32
    return %arg0, %c0_i32 : i32, i32
  }
  func.func @transform_1(%arg0: i32) -> (i32, i32) {
    %c0_i32 = arith.constant 0 : i32
    %c0_i32_0 = arith.constant 0 : i32
    return %arg0, %c0_i32 : i32, i32
  }
  func.func @transform_2(%arg0: i32) -> (i32, i32) {
    %c0_i32 = arith.constant 0 : i32
    %c0_i32_0 = arith.constant 0 : i32
    %c0_i32_1 = arith.constant 0 : i32
    return %c0_i32, %c0_i32_0 : i32, i32
  }
  func.func @transform_3(%arg0: i32) -> (i32, i32) {
    %c0_i32 = arith.constant 0 : i32
    %c0_i32_0 = arith.constant 0 : i32
    %c0_i32_1 = arith.constant 0 : i32
    return %c0_i32, %c0_i32_0 : i32, i32
  }
  func.func @transform_4(%arg0: i32) -> (i32, i32) {
    %c0_i32 = arith.constant 0 : i32
    %c0_i32_0 = arith.constant 0 : i32
    %c0_i32_1 = arith.constant 0 : i32
    return %c0_i32, %c0_i32_0 : i32, i32
  }
  func.func @transform_5(%arg0: i32) -> (i32, i32) {
    %c0_i32 = arith.constant 0 : i32
    %c0_i32_0 = arith.constant 0 : i32
    %c0_i32_1 = arith.constant 0 : i32
    return %c0_i32, %c0_i32_0 : i32, i32
  }
  func.func @transform_6(%arg0: i32) -> (i32, i32) {
    %c0_i32 = arith.constant 0 : i32
    %c0_i32_0 = arith.constant 0 : i32
    %c0_i32_1 = arith.constant 0 : i32
    return %c0_i32, %c0_i32_0 : i32, i32
  }
  func.func @transform_7(%arg0: i32) -> (i32, i32) {
    %c0_i32 = arith.constant 0 : i32
    %c0_i32_0 = arith.constant 0 : i32
    %c0_i32_1 = arith.constant 0 : i32
    return %c0_i32, %c0_i32_0 : i32, i32
  }
  func.func @transform_8(%arg0: i32) -> (i32, i32) {
    %c0_i32 = arith.constant 0 : i32
    %c0_i32_0 = arith.constant 0 : i32
    %c0_i32_1 = arith.constant 0 : i32
    return %c0_i32, %c0_i32_0 : i32, i32
  }
  func.func @transform_9(%arg0: i32) -> (i32, i32) {
    %c0_i32 = arith.constant 0 : i32
    %c0_i32_0 = arith.constant 0 : i32
    return %arg0, %c0_i32 : i32, i32
  }
}

module attributes {stable_mosaic.version = 11 : i64} {
  func.func @_token_embedding_kernel(%arg0: i32, %arg1: memref<16x1xi32, #tpu.memory_space<vmem>>, %arg2: memref<16x4xf32, #tpu.memory_space<vmem>>, %arg3: memref<50x64xf32, #tpu.memory_space<vmem>>, %arg4: memref<4x32xf32, #tpu.memory_space<vmem>>, %arg5: memref<1x32xf32, #tpu.memory_space<vmem>>, %arg6: memref<32x64xf32, #tpu.memory_space<vmem>>, %arg7: memref<1x64xf32, #tpu.memory_space<vmem>>, %arg8: memref<1x64xf32, #tpu.memory_space<vmem>>, %arg9: memref<1x64xf32, #tpu.memory_space<vmem>>, %arg10: memref<16x64xf32, #tpu.memory_space<vmem>>) attributes {dimension_semantics = [#tpu.dimension_semantics<parallel>], iteration_bounds = array<i64: 1>, scalar_prefetch = 0 : i64, scratch_operands = 0 : i64, tpu.core_type = #tpu.core_type<tc>, window_params = [{transform_indices = @transform_0, window_bounds = array<i64: 16, 1>}, {transform_indices = @transform_1, window_bounds = array<i64: 16, 4>}, {pipeline_mode = #tpu.pipeline_mode<synchronous>, transform_indices = @transform_2, window_bounds = array<i64: 50, 64>}, {pipeline_mode = #tpu.pipeline_mode<synchronous>, transform_indices = @transform_3, window_bounds = array<i64: 4, 32>}, {pipeline_mode = #tpu.pipeline_mode<synchronous>, transform_indices = @transform_4, window_bounds = array<i64: 1, 32>}, {pipeline_mode = #tpu.pipeline_mode<synchronous>, transform_indices = @transform_5, window_bounds = array<i64: 32, 64>}, {pipeline_mode = #tpu.pipeline_mode<synchronous>, transform_indices = @transform_6, window_bounds = array<i64: 1, 64>}, {pipeline_mode = #tpu.pipeline_mode<synchronous>, transform_indices = @transform_7, window_bounds = array<i64: 1, 64>}, {pipeline_mode = #tpu.pipeline_mode<synchronous>, transform_indices = @transform_8, window_bounds = array<i64: 1, 64>}, {transform_indices = @transform_9, window_bounds = array<i64: 16, 64>}]} {
    %c0 = arith.constant 0 : index
    %c0_0 = arith.constant 0 : index
    %0 = vector.load %arg1[%c0, %c0_0] : memref<16x1xi32, #tpu.memory_space<vmem>>, vector<16x1xi32>
    %1 = tpu.iota {dimensions = array<i32: 1>} : vector<16x50xi32>
    %2 = vector.broadcast %0 : vector<16x1xi32> to vector<16x50xi32>
    %3 = arith.cmpi eq, %2, %1 : vector<16x50xi32>
    %4 = arith.extui %3 : vector<16x50xi1> to vector<16x50xi32>
    %5 = arith.sitofp %4 : vector<16x50xi32> to vector<16x50xf32>
    %c0_1 = arith.constant 0 : index
    %c0_2 = arith.constant 0 : index
    %6 = vector.load %arg3[%c0_1, %c0_2] : memref<50x64xf32, #tpu.memory_space<vmem>>, vector<50x64xf32>
    %cst = arith.constant dense<0.000000e+00> : vector<16x64xf32>
    %7 = tpu.matmul %5, %6, %cst {dimension_numbers = #tpu.dot_dimension_numbers<[1], [0], [0], [1], [0, 0, 1, 1], [], []>} : vector<16x50xf32>, vector<50x64xf32>, vector<16x64xf32> -> vector<16x64xf32>
    %c0_3 = arith.constant 0 : index
    %c0_4 = arith.constant 0 : index
    %8 = vector.load %arg2[%c0_3, %c0_4] : memref<16x4xf32, #tpu.memory_space<vmem>>, vector<16x4xf32>
    %c0_5 = arith.constant 0 : index
    %c0_6 = arith.constant 0 : index
    %9 = vector.load %arg4[%c0_5, %c0_6] : memref<4x32xf32, #tpu.memory_space<vmem>>, vector<4x32xf32>
    %cst_7 = arith.constant dense<0.000000e+00> : vector<16x32xf32>
    %10 = tpu.matmul %8, %9, %cst_7 {dimension_numbers = #tpu.dot_dimension_numbers<[1], [0], [0], [1], [0, 0, 1, 1], [], []>} : vector<16x4xf32>, vector<4x32xf32>, vector<16x32xf32> -> vector<16x32xf32>
    %c0_8 = arith.constant 0 : index
    %c0_9 = arith.constant 0 : index
    %11 = vector.load %arg5[%c0_8, %c0_9] : memref<1x32xf32, #tpu.memory_space<vmem>>, vector<1x32xf32>
    %12 = vector.broadcast %11 : vector<1x32xf32> to vector<16x32xf32>
    %13 = arith.addf %10, %12 : vector<16x32xf32>
    %cst_10 = arith.constant 0.000000e+00 : f32
    %14 = vector.broadcast %cst_10 : f32 to vector<16x32xf32>
    %15 = arith.maximumf %13, %14 : vector<16x32xf32>
    %c0_11 = arith.constant 0 : index
    %c0_12 = arith.constant 0 : index
    %16 = vector.load %arg6[%c0_11, %c0_12] : memref<32x64xf32, #tpu.memory_space<vmem>>, vector<32x64xf32>
    %cst_13 = arith.constant dense<0.000000e+00> : vector<16x64xf32>
    %17 = tpu.matmul %15, %16, %cst_13 {dimension_numbers = #tpu.dot_dimension_numbers<[1], [0], [0], [1], [0, 0, 1, 1], [], []>} : vector<16x32xf32>, vector<32x64xf32>, vector<16x64xf32> -> vector<16x64xf32>
    %18 = arith.addf %7, %17 : vector<16x64xf32>
    %c0_14 = arith.constant 0 : index
    %c0_15 = arith.constant 0 : index
    %19 = vector.load %arg7[%c0_14, %c0_15] : memref<1x64xf32, #tpu.memory_space<vmem>>, vector<1x64xf32>
    %20 = vector.broadcast %19 : vector<1x64xf32> to vector<16x64xf32>
    %21 = arith.addf %18, %20 : vector<16x64xf32>
    %cst_16 = arith.constant dense<0.000000e+00> : vector<16xf32>
    %22 = vector.multi_reduction <add>, %21, %cst_16 [1] : vector<16x64xf32> to vector<16xf32>
    %23 = vector.shape_cast %22 : vector<16xf32> to vector<16x1xf32>
    %cst_17 = arith.constant 6.400000e+01 : f32
    %24 = vector.broadcast %cst_17 : f32 to vector<16x1xf32>
    %25 = arith.divf %23, %24 : vector<16x1xf32>
    %26 = vector.broadcast %25 : vector<16x1xf32> to vector<16x64xf32>
    %27 = arith.subf %21, %26 : vector<16x64xf32>
    %28 = arith.mulf %27, %27 : vector<16x64xf32>
    %cst_18 = arith.constant dense<0.000000e+00> : vector<16xf32>
    %29 = vector.multi_reduction <add>, %28, %cst_18 [1] : vector<16x64xf32> to vector<16xf32>
    %30 = vector.shape_cast %29 : vector<16xf32> to vector<16x1xf32>
    %cst_19 = arith.constant 6.400000e+01 : f32
    %31 = vector.broadcast %cst_19 : f32 to vector<16x1xf32>
    %32 = arith.divf %30, %31 : vector<16x1xf32>
    %cst_20 = arith.constant 9.99999974E-6 : f32
    %33 = vector.broadcast %cst_20 : f32 to vector<16x1xf32>
    %34 = arith.addf %32, %33 : vector<16x1xf32>
    %35 = math.rsqrt %34 : vector<16x1xf32>
    %36 = vector.broadcast %35 : vector<16x1xf32> to vector<16x64xf32>
    %37 = arith.mulf %27, %36 : vector<16x64xf32>
    %c0_21 = arith.constant 0 : index
    %c0_22 = arith.constant 0 : index
    %38 = vector.load %arg8[%c0_21, %c0_22] : memref<1x64xf32, #tpu.memory_space<vmem>>, vector<1x64xf32>
    %39 = vector.broadcast %38 : vector<1x64xf32> to vector<16x64xf32>
    %40 = arith.mulf %37, %39 : vector<16x64xf32>
    %c0_23 = arith.constant 0 : index
    %c0_24 = arith.constant 0 : index
    %41 = vector.load %arg9[%c0_23, %c0_24] : memref<1x64xf32, #tpu.memory_space<vmem>>, vector<1x64xf32>
    %42 = vector.broadcast %41 : vector<1x64xf32> to vector<16x64xf32>
    %43 = arith.addf %40, %42 : vector<16x64xf32>
    %c0_25 = arith.constant 0 : index
    %c0_26 = arith.constant 0 : index
    %44 = vector.load %arg10[%c0_25, %c0_26] : memref<16x64xf32, #tpu.memory_space<vmem>>, vector<16x64xf32>
    tpu.vector_store %arg10[%c0_25, %c0_26], %43 {strides = array<i32>} : memref<16x64xf32, #tpu.memory_space<vmem>>, vector<16x64xf32>,
    return
  }
  func.func @transform_0(%arg0: i32) -> (i32, i32) {
    %c0_i32 = arith.constant 0 : i32
    %c0_i32_0 = arith.constant 0 : i32
    return %arg0, %c0_i32 : i32, i32
  }
  func.func @transform_1(%arg0: i32) -> (i32, i32) {
    %c0_i32 = arith.constant 0 : i32
    %c0_i32_0 = arith.constant 0 : i32
    return %arg0, %c0_i32 : i32, i32
  }
  func.func @transform_2(%arg0: i32) -> (i32, i32) {
    %c0_i32 = arith.constant 0 : i32
    %c0_i32_0 = arith.constant 0 : i32
    %c0_i32_1 = arith.constant 0 : i32
    return %c0_i32, %c0_i32_0 : i32, i32
  }
  func.func @transform_3(%arg0: i32) -> (i32, i32) {
    %c0_i32 = arith.constant 0 : i32
    %c0_i32_0 = arith.constant 0 : i32
    %c0_i32_1 = arith.constant 0 : i32
    return %c0_i32, %c0_i32_0 : i32, i32
  }
  func.func @transform_4(%arg0: i32) -> (i32, i32) {
    %c0_i32 = arith.constant 0 : i32
    %c0_i32_0 = arith.constant 0 : i32
    %c0_i32_1 = arith.constant 0 : i32
    return %c0_i32, %c0_i32_0 : i32, i32
  }
  func.func @transform_5(%arg0: i32) -> (i32, i32) {
    %c0_i32 = arith.constant 0 : i32
    %c0_i32_0 = arith.constant 0 : i32
    %c0_i32_1 = arith.constant 0 : i32
    return %c0_i32, %c0_i32_0 : i32, i32
  }
  func.func @transform_6(%arg0: i32) -> (i32, i32) {
    %c0_i32 = arith.constant 0 : i32
    %c0_i32_0 = arith.constant 0 : i32
    %c0_i32_1 = arith.constant 0 : i32
    return %c0_i32, %c0_i32_0 : i32, i32
  }
  func.func @transform_7(%arg0: i32) -> (i32, i32) {
    %c0_i32 = arith.constant 0 : i32
    %c0_i32_0 = arith.constant 0 : i32
    %c0_i32_1 = arith.constant 0 : i32
    return %c0_i32, %c0_i32_0 : i32, i32
  }
  func.func @transform_8(%arg0: i32) -> (i32, i32) {
    %c0_i32 = arith.constant 0 : i32
    %c0_i32_0 = arith.constant 0 : i32
    %c0_i32_1 = arith.constant 0 : i32
    return %c0_i32, %c0_i32_0 : i32, i32
  }
  func.func @transform_9(%arg0: i32) -> (i32, i32) {
    %c0_i32 = arith.constant 0 : i32
    %c0_i32_0 = arith.constant 0 : i32
    return %arg0, %c0_i32 : i32, i32
  }
}

</mosaic_0001>

<bundles_post_ra>
// kernel: _token_embedding_jit.1
= control target key start
LH: loop header
LB: loop body
LE: loop exit
PB: predicated region body
PF: predicated region fallthrough
CT: control target
= control target key end

     0   :  { %14 = vsyncpa [#allocation3], 0  ;;  %s647_s0 = inlined_call_operand.vmem [shape: s32[16,1], index: 0, kind: input, shape index: {}]   ;;  %s648_s1 = inlined_call_operand.vmem [shape: f32[16,4], index: 1, kind: input, shape index: {}]   ;;  %s649_s2 = inlined_call_operand.hbm [shape: f32[50,64], index: 2, kind: input, shape index: {}]   ;;  %s650_s3 = inlined_call_operand.vmem [shape: f32[4,32], index: 3, kind: input, shape index: {}]   ;;  %s651_s4 = inlined_call_operand.vmem [shape: f32[1,32], index: 4, kind: input, shape index: {}]   ;;  %s652_s5 = inlined_call_operand.vmem [shape: f32[32,64], index: 5, kind: input, shape index: {}]   ;;  %s653_s6 = inlined_call_operand.vmem [shape: f32[1,64], index: 6, kind: input, shape index: {}]   ;;  %s654_s7 = inlined_call_operand.vmem [shape: f32[1,64], index: 7, kind: input, shape index: {}]   ;;  %s655_s8 = inlined_call_operand.vmem [shape: f32[1,64], index: 8, kind: input, shape index: {}]   ;;  %s656_s9 = inlined_call_operand.hbm [shape: f32[16,64], index: 9, kind: output, shape index: {}]  }
   0x1   :  { %15 = vsyncpa [#allocation4], 0  ;;  %s534_s30 = smov [#allocation2]  }
   0x2   :  { %s25_s10 = sshll.u32 %s534_s30, 4  ;;  %s26_s10 = int_to_ptr.vmem [resolvable:$true] %s25_s10 }
   0x3   :  { %s498_s11 = scalar_lea.vmem %s26_s10, 896  ;;  %p503_p1 = scmp.lt.s32.totalorder %s26_s10, %s26_s10 }
   0x4   :  { %p499_p0 = scmp.ne.s32.totalorder %s26_s10, %s498_s11  ;;  %p504_p2 = scmp.lt.s32.totalorder %s498_s11, %s498_s11 }
   0x6   :  { %p505_p3 = por %p504_p2, %p503_p1 }
   0x8   :  { %p506_p4 = pnand %p505_p3, %p499_p0 }
   0xa   :  { %509 = shalt.err (!%p506_p4)
}
   0xb   :  { %s535_s12 = smov 128   ;;  %s536_s13 = smov 8  }
   0xc   :  { %31 = dma.hbm_to_vmem [thread:$0]  %s649_s2, 896, %s26_s10, [#allocation3], %s535_s12, %s535_s12, %s536_s13  }
   0xd   :  { %530 = dma.done.wait [#allocation3], 896  }
   0xe   :  { %531 = vsyncadd [#allocation3], 4294966400  ;;  %v537_v0 = vmov 0   ;;  %vm87_vm0 = vcmask 1043456   ;;  %vm80_vm1 = vcmask 31744   ;;  %v70_v2 = vld [vmem:[%s648_s1] sm:$0xff]  ;;  %v49_v17 = vlaneseq }
   0xf   :  { %485 = vset.pattern.permute.xlu0 %v537_v0  ;;  %v72_v1 = vld [vmem:[%s650_s3] sm:$0xf]  ;;  %v71_v3 = vld [vmem:[%s648_s1 + $0x8] sm:$0xff]  ;;  %vm261_vm2 = vcmask 1041408   ;;  %448 = vmatprep.mubr.msk.f32.mxu1 %vm80_vm1, %v70_v2  ;;  %v69_v5 = vld [vmem:[#allocation2 + $0x30] sm:$0x3] }
  0x10   :  { %446 = vmatprep.subr.msk.mxu1 %vm87_vm0, %v72_v1  ;;  %v47_v4 = vld [vmem:[%s647_s0] sm:$0xff]  ;;  %v68_v6 = vld [vmem:[#allocation2 + $0x28] sm:$0xff]  ;;  %462 = vmatprep.subr.msk.mxu0 %vm261_vm2, %v69_v5  ;;  %v66_v9 = vld [vmem:[#allocation2 + $0x18] sm:$0xff]  ;;  %v50_v18 = vand.u32 127, %v49_v17  ;;  %vm254_vm3 = vcmask 408576   ;;  %v538_v20 = vmov 0.0  }
  0x11   :  { %447 = vmatpush3.msk.msra.mxu1 %vm87_vm0, %v72_v1  ;;  %52 = vperm.xlu0 %485, %v47_v4   ;;  %v48_v7 = vld [vmem:[%s647_s0 + $0x8] sm:$0xff]  ;;  %v67_v8 = vld [vmem:[#allocation2 + $0x20] sm:$0xff]  ;;  %v65_v10 = vld [vmem:[#allocation2 + $0x10] sm:$0xff]  ;;  %vm172_vm6 = vcmask 261120   ;;  %vm349_vm7 = vcmask 523264   ;;  %s539_s16 = smov [#allocation5]  }
  0x12   :  { %449 = vmatmul.mubr.msk.f32.vlgmr.msra.gmra.mxu1 %vm80_vm1, %v71_v3  ;;  %463 = vmatpush3.msk.msra.mxu0 %vm261_vm2, %v69_v5  ;;  %v64_v11 = vld [vmem:[#allocation2 + $0x8] sm:$0xff]  ;;  %v171_v12 = vld [vmem:[%s652_s5 + $0x18] sm:$0xff]  ;;  %v63_v13 = vld [vmem:[#allocation2] sm:$0xff]  ;;  %s402_s17 = sshll.u32 %s539_s16, 4  ;;  %s403_s17 = int_to_ptr.vmem [resolvable:$true] %s402_s17 }
  0x13   :  { %464 = vmatprep.subr.mxu0 %v68_v6  ;;  %451 = vmatprep.subr.mxu1 %v171_v12  ;;  %v170_v14 = vld [vmem:[%s652_s5 + $0x10] sm:$0xff]  ;;  %v169_v15 = vld [vmem:[%s652_s5 + $0x8] sm:$0xff]  ;;  %v168_v16 = vld [vmem:[%s652_s5] sm:$0xff]  ;;  %s510_s18 = scalar_lea.vmem %s403_s17, 256  ;;  %p515_p6 = scmp.lt.s32.totalorder %s403_s17, %s403_s17 }
  0x14   :  { %465 = vmatpush3.msra.mxu0 %v68_v6  ;;  %452 = vmatpush3.msra.mxu1 %v171_v12  ;;  %v416_v24 = vld [vmem:[%s651_s4] ss:$0 sm:$0xff]  ;;  %p511_p5 = scmp.ne.s32.totalorder %s403_s17, %s510_s18  ;;  %p516_p7 = scmp.lt.s32.totalorder %s510_s18, %s510_s18 }
  0x15   :  { %55 = vperm.xlu0 %485, %v48_v7   ;;  %466 = vmatprep.subr.mxu0 %v67_v8  ;;  %v425_v37 = vld [vmem:[%s653_s6] ss:$0 sm:$0xff] }
  0x16   :  { %467 = vmatpush3.msra.mxu0 %v67_v8  ;;  %453 = vmatprep.subr.mxu1 %v170_v14  ;;  %v426_v59 = vld [vmem:[%s654_s7] ss:$0 sm:$0xff]  ;;  %p517_p8 = por %p516_p7, %p515_p6 }
  0x17   :  { %468 = vmatprep.subr.mxu0 %v66_v9  ;;  %454 = vmatpush3.msra.mxu1 %v170_v14  ;;  %v427_v61 = vld [vmem:[%s655_s8] ss:$0 sm:$0xff] }
  0x18   :  { %469 = vmatpush3.msra.mxu0 %v66_v9  ;;  %455 = vmatprep.subr.mxu1 %v169_v15  ;;  %p518_p9 = pnand %p517_p8, %p511_p5 }
  0x19   :  { %470 = vmatprep.subr.mxu0 %v65_v10  ;;  %456 = vmatpush3.msra.mxu1 %v169_v15 }
  0x1a   :  { %471 = vmatpush3.msra.mxu0 %v65_v10  ;;  %457 = vmatprep.subr.mxu1 %v168_v16 }
  0x1b   :  { %472 = vmatprep.subr.mxu0 %v64_v11  ;;  %458 = vmatpush3.msra.mxu1 %v168_v16 }
  0x1c   :  { %473 = vmatpush3.msra.mxu0 %v64_v11 }
  0x1d   :  { %474 = vmatprep.subr.mxu0 %v63_v13 }
  0x1e   :  { %475 = vmatpush3.msra.mxu0 %v63_v13 }
  0x8c   :  { %v53_v19 = vpop.permute.xlu0 %52 }
  0x8d   :  { %vm57_vm4 = vcmp.eq.s32.totalorder %v53_v19, %v50_v18 }
  0x8e   :  { %v414_v21 = vsel %vm57_vm4, 1.0, %v538_v20 }
  0x8f   :  { %476 = vmatprep.mubr.msk.f32.mxu0 %vm254_vm3, %v414_v21 }
  0x90   :  { %v56_v22 = vpop.permute.xlu0 %55 }
  0x91   :  { %vm58_vm5 = vcmp.eq.s32.totalorder %v56_v22, %v50_v18 }
  0x92   :  { %v415_v23 = vsel %vm58_vm5, 1.0, %v538_v20 }
  0x93   :  { %477 = vmatmul.mubr.msk.f32.vlgmr.msra.gmra.mxu0 %vm254_vm3, %v415_v23 }
  0xd2   :  { %v450_v25 = vpop.f32.mrf.mxu1 }
  0xd3   :  { %v163_v26 = vadd.f32 %v450_v25, %v416_v24 }
  0xd4   :  { %v157_v27 = vpop.f32.mrf.mxu1 }
  0xd5   :  { %v158_v28 = vadd.f32 %v416_v24, %v157_v27  ;;  %v167_v30 = vmax.f32 %v163_v26, 0.0 }
  0xd7   :  { %v166_v29 = vmax.f32 %v158_v28, 0.0 }
  0xd9   :  { %459 = vmatprep.mubr.msk.f32.mxu1 %vm172_vm6, %v166_v29 }
  0xda   :  { %460 = vmatmul.mubr.msk.f32.vlgmr.msra.gmra.mxu1 %vm172_vm6, %v167_v30 }
 0x153   :  { %v478_v31 = vpop.f32.mrf.mxu0 }
 0x155   :  { %v331_v33 = vpop.f32.mrf.mxu0 }
 0x19a   :  { %v461_v32 = vpop.f32.mrf.mxu1 }
 0x19b   :  { %v337_v35 = vadd.f32 %v478_v31, %v461_v32 }
 0x19c   :  { %v245_v34 = vpop.f32.mrf.mxu1 }
 0x19d   :  { %v332_v36 = vadd.f32 %v331_v33, %v245_v34  ;;  %v348_v40 = vadd.f32 %v425_v37, %v337_v35 }
 0x19f   :  { %v347_v38 = vadd.f32 %v425_v37, %v332_v36  ;;  %v353_v41 = vsel %vm349_vm7, %v348_v40, 0.0 }
 0x1a1   :  { %v350_v39 = vsel %vm349_vm7, %v347_v38, 0.0 }
 0x1a2   :  { %351 = vadd.xlane.f32.xlu1 %v350_v39 }
 0x1a6   :  { %354 = vadd.xlane.f32.xlu1 %v353_v41 }
 0x22b   :  { %v352_v42 = vpop.xlane.xlu1 %351 }
 0x22c   :  { %v357_v43 = vmul.f32 0.015625, %v352_v42 }
 0x22e   :  { %v359_v44 = vsub.f32 %v347_v38, %v357_v43 }
 0x22f   :  { %v355_v45 = vpop.xlane.xlu1 %354 }
 0x230   :  { %v358_v46 = vmul.f32 0.015625, %v355_v45  ;;  %v361_v47 = vmul.f32 %v359_v44, %v359_v44 }
 0x232   :  { %v360_v48 = vsub.f32 %v348_v40, %v358_v46  ;;  %v363_v49 = vsel %vm349_vm7, %v361_v47, 0.0 }
 0x233   :  { %364 = vadd.xlane.f32.xlu0 %v363_v49 }
 0x234   :  { %v362_v50 = vmul.f32 %v360_v48, %v360_v48 }
 0x236   :  { %v366_v51 = vsel %vm349_vm7, %v362_v50, 0.0 }
 0x237   :  { %367 = vadd.xlane.f32.xlu1 %v366_v51 }
 0x2bc   :  { %v365_v52 = vpop.xlane.xlu0 %364 }
 0x2bd   :  { %v369_v53 = vmul.f32 0.015625, %v365_v52 }
 0x2bf   :  { %v371_v54 = vadd.f32 1e-05, %v369_v53 }
 0x2c0   :  { %v368_v55 = vpop.xlane.xlu1 %367 }
 0x2c1   :  { %486 = vrsqrt.f32 %v371_v54  ;;  %v370_v56 = vmul.f32 0.015625, %v368_v55 }
 0x2c3   :  { %v372_v57 = vadd.f32 1e-05, %v370_v56 }
 0x2c5   :  { %488 = vrsqrt.f32 %v372_v57 }
 0x2ce   :  { %v487_v58 = vpop.eup %486 }
 0x2cf   :  { %v375_v60 = vmul.f32 %v487_v58, %v359_v44 }
 0x2d1   :  { %v384_v62 = vmul.f32 %v426_v59, %v375_v60 }
 0x2d2   :  { %v489_v63 = vpop.eup %488 }
 0x2d3   :  { %v376_v0 = vmul.f32 %v489_v63, %v360_v48  ;;  %v393_v1 = vadd.f32 %v427_v61, %v384_v62 }
 0x2d5   :  { %v385_v2 = vmul.f32 %v426_v59, %v376_v0  ;;  %395 = vst.msk [vmem:[#allocation5] sm:$0xff] %vm349_vm7, %v393_v1 }
 0x2d7   :  { %v394_v3 = vadd.f32 %v427_v61, %v385_v2 }
 0x2d9   :  { %396 = vst.msk [vmem:[#allocation5 + $0x8] sm:$0xff] %vm349_vm7, %v394_v3 }
 0x2da   :  { %521 = shalt.err (!%p518_p9)
}
 0x2db   :  { %408 = dma.vmem_to_hbm [thread:$0]  %s403_s17, 256, %s656_s9, [#allocation4], %s535_s12, %s535_s12, %s536_s13  }
 0x2dc   :  { %532 = dma.done.wait [#allocation4], 256  }
 0x2dd   :  { %533 = vsyncadd [#allocation4], 4294967040 }
 0x2de   :  { %412 = vsyncpa [#allocation3], 1 }
 0x2df   :  { %413 = vsyncpa [#allocation4], 1 }

// kernel: _token_embedding_jit.1
= control target key start
LH: loop header
LB: loop body
LE: loop exit
PB: predicated region body
PF: predicated region fallthrough
CT: control target
= control target key end

     0   :  { %14 = vsyncpa [#allocation3], 0  ;;  %s647_s0 = inlined_call_operand.vmem [shape: s32[16,1], index: 0, kind: input, shape index: {}]   ;;  %s648_s1 = inlined_call_operand.vmem [shape: f32[16,4], index: 1, kind: input, shape index: {}]   ;;  %s649_s2 = inlined_call_operand.hbm [shape: f32[50,64], index: 2, kind: input, shape index: {}]   ;;  %s650_s3 = inlined_call_operand.vmem [shape: f32[4,32], index: 3, kind: input, shape index: {}]   ;;  %s651_s4 = inlined_call_operand.vmem [shape: f32[1,32], index: 4, kind: input, shape index: {}]   ;;  %s652_s5 = inlined_call_operand.vmem [shape: f32[32,64], index: 5, kind: input, shape index: {}]   ;;  %s653_s6 = inlined_call_operand.vmem [shape: f32[1,64], index: 6, kind: input, shape index: {}]   ;;  %s654_s7 = inlined_call_operand.vmem [shape: f32[1,64], index: 7, kind: input, shape index: {}]   ;;  %s655_s8 = inlined_call_operand.vmem [shape: f32[1,64], index: 8, kind: input, shape index: {}]   ;;  %s656_s9 = inlined_call_operand.hbm [shape: f32[16,64], index: 9, kind: output, shape index: {}]  }
   0x1   :  { %15 = vsyncpa [#allocation4], 0  ;;  %s534_s30 = smov [#allocation2]  }
   0x2   :  { %s25_s10 = sshll.u32 %s534_s30, 4  ;;  %s26_s10 = int_to_ptr.vmem [resolvable:$true] %s25_s10 }
   0x3   :  { %s498_s11 = scalar_lea.vmem %s26_s10, 896  ;;  %p503_p1 = scmp.lt.s32.totalorder %s26_s10, %s26_s10 }
   0x4   :  { %p499_p0 = scmp.ne.s32.totalorder %s26_s10, %s498_s11  ;;  %p504_p2 = scmp.lt.s32.totalorder %s498_s11, %s498_s11 }
   0x6   :  { %p505_p3 = por %p504_p2, %p503_p1 }
   0x8   :  { %p506_p4 = pnand %p505_p3, %p499_p0 }
   0xa   :  { %509 = shalt.err (!%p506_p4)
}
   0xb   :  { %s535_s12 = smov 128   ;;  %s536_s13 = smov 8  }
   0xc   :  { %31 = dma.hbm_to_vmem [thread:$0]  %s649_s2, 896, %s26_s10, [#allocation3], %s535_s12, %s535_s12, %s536_s13  }
   0xd   :  { %530 = dma.done.wait [#allocation3], 896  }
   0xe   :  { %531 = vsyncadd [#allocation3], 4294966400  ;;  %v537_v0 = vmov 0   ;;  %vm87_vm0 = vcmask 1043456   ;;  %vm80_vm1 = vcmask 31744   ;;  %v70_v2 = vld [vmem:[%s648_s1] sm:$0xff]  ;;  %v49_v17 = vlaneseq }
   0xf   :  { %485 = vset.pattern.permute.xlu0 %v537_v0  ;;  %v72_v1 = vld [vmem:[%s650_s3] sm:$0xf]  ;;  %v71_v3 = vld [vmem:[%s648_s1 + $0x8] sm:$0xff]  ;;  %vm261_vm2 = vcmask 1041408   ;;  %448 = vmatprep.mubr.msk.f32.mxu1 %vm80_vm1, %v70_v2  ;;  %v69_v5 = vld [vmem:[#allocation2 + $0x30] sm:$0x3] }
  0x10   :  { %446 = vmatprep.subr.msk.mxu1 %vm87_vm0, %v72_v1  ;;  %v47_v4 = vld [vmem:[%s647_s0] sm:$0xff]  ;;  %v68_v6 = vld [vmem:[#allocation2 + $0x28] sm:$0xff]  ;;  %462 = vmatprep.subr.msk.mxu0 %vm261_vm2, %v69_v5  ;;  %v66_v9 = vld [vmem:[#allocation2 + $0x18] sm:$0xff]  ;;  %v50_v18 = vand.u32 127, %v49_v17  ;;  %vm254_vm3 = vcmask 408576   ;;  %v538_v20 = vmov 0.0  }
  0x11   :  { %447 = vmatpush3.msk.msra.mxu1 %vm87_vm0, %v72_v1  ;;  %52 = vperm.xlu0 %485, %v47_v4   ;;  %v48_v7 = vld [vmem:[%s647_s0 + $0x8] sm:$0xff]  ;;  %v67_v8 = vld [vmem:[#allocation2 + $0x20] sm:$0xff]  ;;  %v65_v10 = vld [vmem:[#allocation2 + $0x10] sm:$0xff]  ;;  %vm172_vm6 = vcmask 261120   ;;  %vm349_vm7 = vcmask 523264   ;;  %s539_s16 = smov [#allocation5]  }
  0x12   :  { %449 = vmatmul.mubr.msk.f32.vlgmr.msra.gmra.mxu1 %vm80_vm1, %v71_v3  ;;  %463 = vmatpush3.msk.msra.mxu0 %vm261_vm2, %v69_v5  ;;  %v64_v11 = vld [vmem:[#allocation2 + $0x8] sm:$0xff]  ;;  %v171_v12 = vld [vmem:[%s652_s5 + $0x18] sm:$0xff]  ;;  %v63_v13 = vld [vmem:[#allocation2] sm:$0xff]  ;;  %s402_s17 = sshll.u32 %s539_s16, 4  ;;  %s403_s17 = int_to_ptr.vmem [resolvable:$true] %s402_s17 }
  0x13   :  { %464 = vmatprep.subr.mxu0 %v68_v6  ;;  %451 = vmatprep.subr.mxu1 %v171_v12  ;;  %v170_v14 = vld [vmem:[%s652_s5 + $0x10] sm:$0xff]  ;;  %v169_v15 = vld [vmem:[%s652_s5 + $0x8] sm:$0xff]  ;;  %v168_v16 = vld [vmem:[%s652_s5] sm:$0xff]  ;;  %s510_s18 = scalar_lea.vmem %s403_s17, 256  ;;  %p515_p6 = scmp.lt.s32.totalorder %s403_s17, %s403_s17 }
  0x14   :  { %465 = vmatpush3.msra.mxu0 %v68_v6  ;;  %452 = vmatpush3.msra.mxu1 %v171_v12  ;;  %v416_v24 = vld [vmem:[%s651_s4] ss:$0 sm:$0xff]  ;;  %p511_p5 = scmp.ne.s32.totalorder %s403_s17, %s510_s18  ;;  %p516_p7 = scmp.lt.s32.totalorder %s510_s18, %s510_s18 }
  0x15   :  { %55 = vperm.xlu0 %485, %v48_v7   ;;  %466 = vmatprep.subr.mxu0 %v67_v8  ;;  %v425_v37 = vld [vmem:[%s653_s6] ss:$0 sm:$0xff] }
  0x16   :  { %467 = vmatpush3.msra.mxu0 %v67_v8  ;;  %453 = vmatprep.subr.mxu1 %v170_v14  ;;  %v426_v59 = vld [vmem:[%s654_s7] ss:$0 sm:$0xff]  ;;  %p517_p8 = por %p516_p7, %p515_p6 }
  0x17   :  { %468 = vmatprep.subr.mxu0 %v66_v9  ;;  %454 = vmatpush3.msra.mxu1 %v170_v14  ;;  %v427_v61 = vld [vmem:[%s655_s8] ss:$0 sm:$0xff] }
  0x18   :  { %469 = vmatpush3.msra.mxu0 %v66_v9  ;;  %455 = vmatprep.subr.mxu1 %v169_v15  ;;  %p518_p9 = pnand %p517_p8, %p511_p5 }
  0x19   :  { %470 = vmatprep.subr.mxu0 %v65_v10  ;;  %456 = vmatpush3.msra.mxu1 %v169_v15 }
  0x1a   :  { %471 = vmatpush3.msra.mxu0 %v65_v10  ;;  %457 = vmatprep.subr.mxu1 %v168_v16 }
  0x1b   :  { %472 = vmatprep.subr.mxu0 %v64_v11  ;;  %458 = vmatpush3.msra.mxu1 %v168_v16 }
  0x1c   :  { %473 = vmatpush3.msra.mxu0 %v64_v11 }
  0x1d   :  { %474 = vmatprep.subr.mxu0 %v63_v13 }
  0x1e   :  { %475 = vmatpush3.msra.mxu0 %v63_v13 }
  0x8c   :  { %v53_v19 = vpop.permute.xlu0 %52 }
  0x8d   :  { %vm57_vm4 = vcmp.eq.s32.totalorder %v53_v19, %v50_v18 }
  0x8e   :  { %v414_v21 = vsel %vm57_vm4, 1.0, %v538_v20 }
  0x8f   :  { %476 = vmatprep.mubr.msk.f32.mxu0 %vm254_vm3, %v414_v21 }
  0x90   :  { %v56_v22 = vpop.permute.xlu0 %55 }
  0x91   :  { %vm58_vm5 = vcmp.eq.s32.totalorder %v56_v22, %v50_v18 }
  0x92   :  { %v415_v23 = vsel %vm58_vm5, 1.0, %v538_v20 }
  0x93   :  { %477 = vmatmul.mubr.msk.f32.vlgmr.msra.gmra.mxu0 %vm254_vm3, %v415_v23 }
  0xd2   :  { %v450_v25 = vpop.f32.mrf.mxu1 }
  0xd3   :  { %v163_v26 = vadd.f32 %v450_v25, %v416_v24 }
  0xd4   :  { %v157_v27 = vpop.f32.mrf.mxu1 }
  0xd5   :  { %v158_v28 = vadd.f32 %v416_v24, %v157_v27  ;;  %v167_v30 = vmax.f32 %v163_v26, 0.0 }
  0xd7   :  { %v166_v29 = vmax.f32 %v158_v28, 0.0 }
  0xd9   :  { %459 = vmatprep.mubr.msk.f32.mxu1 %vm172_vm6, %v166_v29 }
  0xda   :  { %460 = vmatmul.mubr.msk.f32.vlgmr.msra.gmra.mxu1 %vm172_vm6, %v167_v30 }
 0x153   :  { %v478_v31 = vpop.f32.mrf.mxu0 }
 0x155   :  { %v331_v33 = vpop.f32.mrf.mxu0 }
 0x19a   :  { %v461_v32 = vpop.f32.mrf.mxu1 }
 0x19b   :  { %v337_v35 = vadd.f32 %v478_v31, %v461_v32 }
 0x19c   :  { %v245_v34 = vpop.f32.mrf.mxu1 }
 0x19d   :  { %v332_v36 = vadd.f32 %v331_v33, %v245_v34  ;;  %v348_v40 = vadd.f32 %v425_v37, %v337_v35 }
 0x19f   :  { %v347_v38 = vadd.f32 %v425_v37, %v332_v36  ;;  %v353_v41 = vsel %vm349_vm7, %v348_v40, 0.0 }
 0x1a1   :  { %v350_v39 = vsel %vm349_vm7, %v347_v38, 0.0 }
 0x1a2   :  { %351 = vadd.xlane.f32.xlu1 %v350_v39 }
 0x1a6   :  { %354 = vadd.xlane.f32.xlu1 %v353_v41 }
 0x22b   :  { %v352_v42 = vpop.xlane.xlu1 %351 }
 0x22c   :  { %v357_v43 = vmul.f32 0.015625, %v352_v42 }
 0x22e   :  { %v359_v44 = vsub.f32 %v347_v38, %v357_v43 }
 0x22f   :  { %v355_v45 = vpop.xlane.xlu1 %354 }
 0x230   :  { %v358_v46 = vmul.f32 0.015625, %v355_v45  ;;  %v361_v47 = vmul.f32 %v359_v44, %v359_v44 }
 0x232   :  { %v360_v48 = vsub.f32 %v348_v40, %v358_v46  ;;  %v363_v49 = vsel %vm349_vm7, %v361_v47, 0.0 }
 0x233   :  { %364 = vadd.xlane.f32.xlu0 %v363_v49 }
 0x234   :  { %v362_v50 = vmul.f32 %v360_v48, %v360_v48 }
 0x236   :  { %v366_v51 = vsel %vm349_vm7, %v362_v50, 0.0 }
 0x237   :  { %367 = vadd.xlane.f32.xlu1 %v366_v51 }
 0x2bc   :  { %v365_v52 = vpop.xlane.xlu0 %364 }
 0x2bd   :  { %v369_v53 = vmul.f32 0.015625, %v365_v52 }
 0x2bf   :  { %v371_v54 = vadd.f32 1e-05, %v369_v53 }
 0x2c0   :  { %v368_v55 = vpop.xlane.xlu1 %367 }
 0x2c1   :  { %486 = vrsqrt.f32 %v371_v54  ;;  %v370_v56 = vmul.f32 0.015625, %v368_v55 }
 0x2c3   :  { %v372_v57 = vadd.f32 1e-05, %v370_v56 }
 0x2c5   :  { %488 = vrsqrt.f32 %v372_v57 }
 0x2ce   :  { %v487_v58 = vpop.eup %486 }
 0x2cf   :  { %v375_v60 = vmul.f32 %v487_v58, %v359_v44 }
 0x2d1   :  { %v384_v62 = vmul.f32 %v426_v59, %v375_v60 }
 0x2d2   :  { %v489_v63 = vpop.eup %488 }
 0x2d3   :  { %v376_v0 = vmul.f32 %v489_v63, %v360_v48  ;;  %v393_v1 = vadd.f32 %v427_v61, %v384_v62 }
 0x2d5   :  { %v385_v2 = vmul.f32 %v426_v59, %v376_v0  ;;  %395 = vst.msk [vmem:[#allocation5] sm:$0xff] %vm349_vm7, %v393_v1 }
 0x2d7   :  { %v394_v3 = vadd.f32 %v427_v61, %v385_v2 }
 0x2d9   :  { %396 = vst.msk [vmem:[#allocation5 + $0x8] sm:$0xff] %vm349_vm7, %v394_v3 }
 0x2da   :  { %521 = shalt.err (!%p518_p9)
}
 0x2db   :  { %408 = dma.vmem_to_hbm [thread:$0]  %s403_s17, 256, %s656_s9, [#allocation4], %s535_s12, %s535_s12, %s536_s13  }
 0x2dc   :  { %532 = dma.done.wait [#allocation4], 256  }
 0x2dd   :  { %533 = vsyncadd [#allocation4], 4294967040 }
 0x2de   :  { %412 = vsyncpa [#allocation3], 1 }
 0x2df   :  { %413 = vsyncpa [#allocation4], 1 }

</bundles_post_ra>
